<compile_context>
chip_gen: v5e
topology: v5e:2x2
jax: 0.10.0
libtpu: 0.0.40
codegen_flags: <defaults>
</compile_context>

<pallas_src>
import functools
import math

import jax
import jax.numpy as jnp
from jax.experimental import pallas as pl
from jax.experimental.pallas import tpu as pltpu


def _round_up(x: int, m: int) -> int:
    return (x + m - 1) // m * m


def _gate_conv_kernel(w_ref, b_ref, x_ref, out_ref, *, c_out: int):
    """Fused conv-as-matmul + bias + GLU.

    w   : (2*c_out, K)     VMEM-resident across the whole grid
    b   : (2*c_out, 1)     VMEM-resident across the whole grid
    x   : (K, TILE_M)      patch tile (M lane-dense)
    out : (c_out, TILE_M)
    """
    y = jnp.dot(w_ref[...], x_ref[...], preferred_element_type=jnp.float32)
    y = y + b_ref[...]                       # lane-broadcast bias add
    o = y[:c_out, :]
    g = y[c_out:, :]
    out_ref[...] = (o * jax.nn.sigmoid(g)).astype(out_ref.dtype)


def gate_conv2d(inputs, weight, bias, kernel_size, stride, padding,
                tile_m: int = 4096):
    """GateConv2d.forward.

    inputs : (N, C_in, H, W) float32 (a 3-D input is unsqueezed to N,1,H,W)
    weight : (2*C_out, C_in, k_t, k_f)  -- PyTorch OIHW conv weight
    bias   : (2*C_out,)
    padding: ConstantPad2d tuple (left, right, top, bottom) on (W, H);
             only applied when k_t > 1 (matches the PyTorch module).
    returns: (N, C_out, H_out, W_out)
    """
    if inputs.ndim == 3:
        inputs = inputs[:, None, :, :]
    k_t, k_f = kernel_size
    s_t, s_f = stride
    if k_t > 1:
        pad_l, pad_r, pad_t, pad_b = padding
        inputs = jnp.pad(inputs, ((0, 0), (0, 0), (pad_t, pad_b), (pad_l, pad_r)))

    N, C, H, W = inputs.shape
    H_out = (H - k_t) // s_t + 1
    W_out = (W - k_f) // s_f + 1

    two_cout = weight.shape[0]
    c_out = two_cout // 2
    K = C * k_t * k_f
    M = N * H_out * W_out

    # im2col glue, built directly in the (K, M) layout the kernel consumes.
    # Feature order along K is (C, k_t, k_f), matching the OIHW weight flatten.
    # (stack + transpose + reshape fuse into a single XLA copy pass.)
    cols = []
    for i in range(k_t):
        for j in range(k_f):
            cols.append(inputs[:, :, i:i + s_t * H_out:s_t, j:j + s_f * W_out:s_f])
    patches = jnp.stack(cols, axis=2)                      # (N, C, k_t*k_f, H_out, W_out)
    patches = patches.transpose(1, 2, 0, 3, 4).reshape(K, M)
    # TODO(synk): pull patch extraction into the kernel itself (overlapping time
    # windows need pl.Element / manual DMA) to remove the K-fold HBM blowup.

    tile_m = min(tile_m, _round_up(M, 128))
    m_pad = _round_up(M, tile_m)
    if m_pad != M:
        patches = jnp.pad(patches, ((0, 0), (0, m_pad - M)))

    w_mat = weight.reshape(two_cout, K).astype(jnp.float32)   # (2*C_out, K)
    b_vec = bias.reshape(two_cout, 1).astype(jnp.float32)     # (2*C_out, 1)

    grid = (m_pad // tile_m,)
    cost = pl.CostEstimate(
        flops=2 * m_pad * K * two_cout + 4 * m_pad * c_out,
        transcendentals=m_pad * c_out,
        bytes_accessed=4 * (K * m_pad + two_cout * (K + 1) + c_out * m_pad),
    )

    out_flat = pl.pallas_call(
        functools.partial(_gate_conv_kernel, c_out=c_out),
        out_shape=jax.ShapeDtypeStruct((c_out, m_pad), jnp.float32),
        grid=grid,
        in_specs=[
            pl.BlockSpec((two_cout, K), lambda m: (0, 0)),   # weights: stay in VMEM
            pl.BlockSpec((two_cout, 1), lambda m: (0, 0)),   # bias:    stays in VMEM
            pl.BlockSpec((K, tile_m), lambda m: (0, m)),     # patch tile (pipelined)
        ],
        out_specs=pl.BlockSpec((c_out, tile_m), lambda m: (0, m)),
        compiler_params=pltpu.CompilerParams(
            dimension_semantics=("parallel",)),
        cost_estimate=cost,
    )(w_mat, b_vec, patches)

    # (c_out, M) -> NCHW
    out = out_flat[:, :M].reshape(c_out, N, H_out, W_out)
    return out.transpose(1, 0, 2, 3)


def _reference(inputs, weight, bias, kernel_size, stride, padding):
    """Pure-JAX reference (mirrors the PyTorch forward) for a sanity check."""
    if inputs.ndim == 3:
        inputs = inputs[:, None, :, :]
    if kernel_size[0] > 1:
        pad_l, pad_r, pad_t, pad_b = padding
        inputs = jnp.pad(inputs, ((0, 0), (0, 0), (pad_t, pad_b), (pad_l, pad_r)))
    y = jax.lax.conv_general_dilated(
        inputs, weight, window_strides=stride, padding="VALID",
        dimension_numbers=("NCHW", "OIHW", "NCHW"))
    y = y + bias[None, :, None, None]
    c = y.shape[1] // 2
    return y[:, :c] * jax.nn.sigmoid(y[:, c:])


if __name__ == "__main__":
    # Module config (small, consistent with GateConv2d usage in TaylorBeamformer).
    in_channels, out_channels = 4, 8
    kernel_size = (2, 3)          # (k_t, k_f), k_t > 1 -> ConstantPad2d branch
    stride = (1, 2)
    padding = (1, 1, 1, 0)        # (left, right, top, bottom) for ConstantPad2d

    key = jax.random.PRNGKey(0)
    kx, kw, kb = jax.random.split(key, 3)

    # Input: NCHW
    x = jax.random.normal(kx, (2, in_channels, 16, 16), dtype=jnp.float32)

    # Deterministic Conv2d-style init: U(-bound, bound), bound = 1/sqrt(fan_in)
    fan_in = in_channels * kernel_size[0] * kernel_size[1]
    bound = 1.0 / math.sqrt(fan_in)
    weight = jax.random.uniform(
        kw, (out_channels * 2, in_channels, kernel_size[0], kernel_size[1]),
        minval=-bound, maxval=bound, dtype=jnp.float32)
    bias = jax.random.uniform(
        kb, (out_channels * 2,), minval=-bound, maxval=bound, dtype=jnp.float32)

    out = gate_conv2d(x, weight, bias, kernel_size, stride, padding)
    out = jax.block_until_ready(out)

    ref = jax.block_until_ready(
        _reference(x, weight, bias, kernel_size, stride, padding))
    assert out.shape == ref.shape, (out.shape, ref.shape)
    assert jnp.allclose(out, ref, atol=1e-4, rtol=1e-4), float(
        jnp.max(jnp.abs(out - ref)))

    print("KERNEL_OK")
</pallas_src>

<mosaic_0001>
module attributes {stable_mosaic.version = 11 : i64} {
  func.func @_gate_conv_kernel(%arg0: i32, %arg1: memref<16x24xf32, #tpu.memory_space<vmem>>, %arg2: memref<16x1xf32, #tpu.memory_space<vmem>>, %arg3: memref<24x256xf32, #tpu.memory_space<vmem>>, %arg4: memref<8x256xf32, #tpu.memory_space<vmem>>) attributes {dimension_semantics = [#tpu.dimension_semantics<parallel>], iteration_bounds = array<i64: 1>, scalar_prefetch = 0 : i64, scratch_operands = 0 : i64, tpu.core_type = #tpu.core_type<tc>, window_params = [{pipeline_mode = #tpu.pipeline_mode<synchronous>, transform_indices = @transform_0, window_bounds = array<i64: 16, 24>}, {pipeline_mode = #tpu.pipeline_mode<synchronous>, transform_indices = @transform_1, window_bounds = array<i64: 16, 1>}, {transform_indices = @transform_2, window_bounds = array<i64: 24, 256>}, {transform_indices = @transform_3, window_bounds = array<i64: 8, 256>}]} {
    %c0 = arith.constant 0 : index
    %c0_0 = arith.constant 0 : index
    %0 = vector.load %arg1[%c0, %c0_0] : memref<16x24xf32, #tpu.memory_space<vmem>>, vector<16x24xf32>
    %c0_1 = arith.constant 0 : index
    %c0_2 = arith.constant 0 : index
    %1 = vector.load %arg3[%c0_1, %c0_2] : memref<24x256xf32, #tpu.memory_space<vmem>>, vector<24x256xf32>
    %cst = arith.constant dense<0.000000e+00> : vector<16x256xf32>
    %2 = tpu.matmul %0, %1, %cst {dimension_numbers = #tpu.dot_dimension_numbers<[1], [0], [0], [1], [0, 0, 1, 1], [], []>} : vector<16x24xf32>, vector<24x256xf32>, vector<16x256xf32> -> vector<16x256xf32>
    %c0_3 = arith.constant 0 : index
    %c0_4 = arith.constant 0 : index
    %3 = vector.load %arg2[%c0_3, %c0_4] : memref<16x1xf32, #tpu.memory_space<vmem>>, vector<16x1xf32>
    %4 = vector.broadcast %3 : vector<16x1xf32> to vector<16x256xf32>
    %5 = arith.addf %2, %4 : vector<16x256xf32>
    %6 = vector.extract_strided_slice %5 {offsets = [0, 0], sizes = [8, 256], strides = [1, 1]} : vector<16x256xf32> to vector<8x256xf32>
    %7 = vector.extract_strided_slice %5 {offsets = [8, 0], sizes = [8, 256], strides = [1, 1]} : vector<16x256xf32> to vector<8x256xf32>
    %8 = arith.negf %7 : vector<8x256xf32>
    %9 = math.exp %8 : vector<8x256xf32>
    %cst_5 = arith.constant 1.000000e+00 : f32
    %10 = vector.broadcast %cst_5 : f32 to vector<8x256xf32>
    %11 = arith.addf %10, %9 : vector<8x256xf32>
    %12 = arith.divf %10, %11 : vector<8x256xf32>
    %13 = arith.mulf %6, %12 : vector<8x256xf32>
    %c0_6 = arith.constant 0 : index
    %c0_7 = arith.constant 0 : index
    %14 = vector.load %arg4[%c0_6, %c0_7] : memref<8x256xf32, #tpu.memory_space<vmem>>, vector<8x256xf32>
    tpu.vector_store %arg4[%c0_6, %c0_7], %13 {strides = array<i32>} : memref<8x256xf32, #tpu.memory_space<vmem>>, vector<8x256xf32>,
    return
  }
  func.func @transform_0(%arg0: i32) -> (i32, i32) {
    %c0_i32 = arith.constant 0 : i32
    %c0_i32_0 = arith.constant 0 : i32
    %c0_i32_1 = arith.constant 0 : i32
    return %c0_i32, %c0_i32_0 : i32, i32
  }
  func.func @transform_1(%arg0: i32) -> (i32, i32) {
    %c0_i32 = arith.constant 0 : i32
    %c0_i32_0 = arith.constant 0 : i32
    %c0_i32_1 = arith.constant 0 : i32
    return %c0_i32, %c0_i32_0 : i32, i32
  }
  func.func @transform_2(%arg0: i32) -> (i32, i32) {
    %c0_i32 = arith.constant 0 : i32
    %c0_i32_0 = arith.constant 0 : i32
    return %c0_i32, %arg0 : i32, i32
  }
  func.func @transform_3(%arg0: i32) -> (i32, i32) {
    %c0_i32 = arith.constant 0 : i32
    %c0_i32_0 = arith.constant 0 : i32
    return %c0_i32, %arg0 : i32, i32
  }
}

</mosaic_0001>

<bundles_post_ra>
// kernel: tpu_custom_call.1
= control target key start
LH: loop header
LB: loop body
LE: loop exit
PB: predicated region body
PF: predicated region fallthrough
CT: control target
= control target key end

     0   :  { %8 = vsyncpa [#allocation3], 0  ;;  %s284_s0 = inlined_call_operand.vmem [shape: f32[16,24], index: 0, kind: input, shape index: {}]   ;;  %s285_s1 = inlined_call_operand.vmem [shape: f32[16,1], index: 1, kind: input, shape index: {}]   ;;  %s286_s2 = inlined_call_operand.hbm [shape: f32[24,256], index: 2, kind: input, shape index: {}]   ;;  %s287_s3 = inlined_call_operand.hbm [shape: f32[8,256], index: 3, kind: output, shape index: {}]  }
   0x1   :  { %9 = vsyncpa [#allocation4], 0  ;;  %s18_s14 = sshll.u32 %s286_s2, 4  ;;  %s241_s15 = smov [#allocation2]   ;;  %s19_s14 = int_to_ptr.hbm [resolvable:$true] %s18_s14 }
   0x2   :  { %s20_s16 = sshll.u32 %s241_s15, 4  ;;  %s242_s17 = smov 256   ;;  %s21_s16 = int_to_ptr.vmem [resolvable:$true] %s20_s16 }
   0x3   :  { %s243_s18 = smov 16  }
   0x4   :  { %26 = dma.hbm_to_vmem [thread:$0]  %s19_s14, 768, %s21_s16, [#allocation3], %s242_s17, %s242_s17, %s243_s18  }
   0x5   :  { %237 = dma.done.wait [#allocation3], 768  }
   0x6   :  { %238 = vsyncadd [#allocation3], 4294966528  ;;  %v244_v0 = vmov 0   ;;  %v37_v1 = vld [vmem:[#allocation2 + $0x20] sm:$0xff]  ;;  %v38_v2 = vld [vmem:[#allocation2 + $0x28] sm:$0xff]  ;;  %vm51_vm0 = vcmask 195584  }
   0x7   :  { %180 = vset.pattern.permute.xlu0 %v244_v0  ;;  %v35_v3 = vld [vmem:[#allocation2 + $0x10] sm:$0xff]  ;;  %169 = vmatpush.msra.mxu2 %v37_v1  ;;  %v36_v4 = vld [vmem:[#allocation2 + $0x18] sm:$0xff]  ;;  %v33_v5 = vld [vmem:[#allocation2] sm:$0xff]  ;;  %s153_s28 = sshll.u32 %s287_s3, 4  ;;  %s154_s28 = int_to_ptr.hbm [resolvable:$true] %s153_s28 }
   0x8   :  { %172 = vmatpush.msra.mxu3 %v38_v2  ;;  %v34_v6 = vld [vmem:[#allocation2 + $0x8] sm:$0xff]  ;;  %71 = vmatpush.msra.mxu0 %v37_v1  ;;  %v31_v8 = vld [vmem:[%s284_s0] sm:$0xff] }
   0x9   :  { %94 = vmatpush.msra.mxu1 %v38_v2  ;;  %170 = vmatpush.msra.mxu2 %v35_v3  ;;  %v32_v7 = vld [vmem:[%s284_s0 + $0x8] sm:$0xff]  ;;  %v39_v10 = vld [vmem:[%s285_s1] sm:$0xff]  ;;  %s245_s0 = smov [#allocation5]  }
   0xa   :  { %173 = vmatpush.msra.mxu3 %v36_v4  ;;  %72 = vmatpush.msra.mxu0 %v35_v3  ;;  %v40_v9 = vld [vmem:[%s285_s1 + $0x8] sm:$0xff]  ;;  %s151_s1 = sshll.u32 %s245_s0, 4  ;;  %s152_s1 = int_to_ptr.vmem [resolvable:$true] %s151_s1 }
   0xb   :  { %95 = vmatpush.msra.mxu1 %v36_v4  ;;  %171 = vmatpush.msra.mxu2 %v33_v5 }
   0xc   :  { %174 = vmatpush.msra.mxu3 %v34_v6  ;;  %164 = vmatmul.msk.f32.vlgmr.msra.gmra.mxu2 %vm51_vm0, %v32_v7 }
   0xd   :  { %166 = vmatmul.msk.f32.vlgmr.msra.gmra.mxu3 %vm51_vm0, %v32_v7  ;;  %73 = vmatpush.msra.mxu0 %v33_v5 }
   0xe   :  { %96 = vmatpush.msra.mxu1 %v34_v6  ;;  %163 = vmatmul.msk.f32.vlgmr.msra.gmra.mxu0 %vm51_vm0, %v31_v8 }
   0xf   :  { %165 = vmatmul.msk.f32.vlgmr.msra.gmra.mxu1 %vm51_vm0, %v31_v8  ;;  %48 = vperm.xlu0 %180, %v40_v9  }
  0x17   :  { %43 = vperm.xlu0 %180, %v39_v10  }
  0x81   :  { %v49_v11 = vpop.permute.xlu0 %48 }
  0x89   :  { %v44_v32 = vpop.permute.xlu0 %43 }
  0x8b   :  { %v75_v33 = vpop.f32.mrf.mxu0 }
  0x8c   :  { %v98_v36 = vpop.f32.mrf.mxu1  ;;  %v76_v40 = vadd.f32 %v75_v33, %v44_v32 }
  0x8d   :  { %v99_v43 = vadd.f32 %v98_v36, %v44_v32 }
  0x8f   :  { %v78_v12 = vpop.f32.mrf.mxu2 }
  0x90   :  { %v101_v13 = vpop.f32.mrf.mxu3  ;;  %v79_v14 = vadd.f32 %v78_v12, %v49_v11 }
  0x91   :  { %v102_v15 = vadd.f32 %v101_v13, %v49_v11 }
  0x92   :  { %v167_v16 = vmul.f32 -1.442695, %v79_v14 }
  0x93   :  { %v168_v17 = vmul.f32 -1.442695, %v102_v15 }
  0x94   :  { %181 = vpow2.f32 %v167_v16 }
  0x95   :  { %183 = vpow2.f32 %v168_v17 }
  0x9a   :  { %v182_v18 = vpop.eup %181 }
  0x9b   :  { %v184_v19 = vpop.eup %183  ;;  %v110_v20 = vadd.f32 1.0, %v182_v18 }
  0x9c   :  { %v111_v21 = vadd.f32 1.0, %v184_v19 }
  0x9d   :  { %185 = vrcp.f32 %v110_v20  ;;  %v123_v28 = vand.u32 2147483648, %v110_v20  ;;  %v121_v30 = vand.u32 2147483647, %v110_v20  ;;  %vm117_vm3 = vweird.f32 %v110_v20 }
  0x9e   :  { %187 = vrcp.f32 %v111_v21  ;;  %v138_v31 = vand.u32 2147483648, %v111_v21  ;;  %v136_v35 = vand.u32 2147483647, %v111_v21  ;;  %vm132_vm5 = vweird.f32 %v111_v21 }
  0x9f   :  { %v124_v38 = vor.u32 1.1754944e-38, %v123_v28  ;;  %vm122_vm6 = vcmp.eq.f32.partialorder %v121_v30, 8.507059e+37 }
  0xa0   :  { %v139_v42 = vor.u32 1.1754944e-38, %v138_v31  ;;  %vm137_vm8 = vcmp.eq.f32.partialorder %v136_v35, 8.507059e+37 }
  0xa3   :  { %v186_v22 = vpop.eup %185 }
  0xa4   :  { %v188_v23 = vpop.eup %187  ;;  %v113_v24 = vmul.f32 %v186_v22, %v110_v20  ;;  %vm118_vm1 = vweird.f32 %v186_v22 }
  0xa5   :  { %v128_v25 = vmul.f32 %v188_v23, %v111_v21  ;;  %vm133_vm2 = vweird.f32 %v188_v23  ;;  %vm119_vm4 = vmor %vm117_vm3, %vm118_vm1 }
  0xa6   :  { %v114_v26 = vsub.f32 1.0, %v113_v24  ;;  %vm134_vm7 = vmor %vm132_vm5, %vm133_vm2 }
  0xa7   :  { %v129_v27 = vsub.f32 1.0, %v128_v25 }
  0xa8   :  { %v115_v29 = vmul.f32 %v186_v22, %v114_v26 }
  0xa9   :  { %v130_v34 = vmul.f32 %v188_v23, %v129_v27 }
  0xaa   :  { %v116_v37 = vadd.f32 %v186_v22, %v115_v29 }
  0xab   :  { %v131_v39 = vadd.f32 %v188_v23, %v130_v34 }
  0xac   :  { %v120_v41 = vsel %vm119_vm4, %v186_v22, %v116_v37 }
  0xad   :  { %v125_v44 = vsel %vm122_vm6, %v124_v38, %v120_v41  ;;  %v135_v45 = vsel %vm134_vm7, %v188_v23, %v131_v39 }
  0xae   :  { %v140_v46 = vsel %vm137_vm8, %v139_v42, %v135_v45  ;;  %v142_v47 = vmul.f32 %v125_v44, %v76_v40 }
  0xaf   :  { %v143_v48 = vmul.f32 %v140_v46, %v99_v43 }
  0xb0   :  { %144 = vst [vmem:[#allocation5] sm:$0xff] %v142_v47 }
  0xb1   :  { %145 = vst [vmem:[#allocation5 + $0x8] sm:$0xff] %v143_v48 }
  0xb2   :  { %156 = dma.vmem_to_hbm [thread:$0]  %s152_s1, 256, %s154_s28, [#allocation4]  }
  0xb3   :  { %239 = dma.done.wait [#allocation4], 256  }
  0xb4   :  { %240 = vsyncadd [#allocation4], 4294967040 }
  0xb5   :  { %161 = vsyncpa [#allocation3], 1 }
  0xb6   :  { %162 = vsyncpa [#allocation4], 1 }

</bundles_post_ra>
